<compile_context>
chip_gen: v7x
topology: tpu7x:2x2x1
jax: 0.10.0
libtpu: 0.0.40
codegen_flags: <defaults>
</compile_context>

<pallas_src>
import jax
import jax.numpy as jnp
from jax.experimental import pallas as pl
from jax.experimental.pallas import tpu as pltpu

SEG = 8          # segment_length
HIDDEN = 40      # decoder hidden dim (fixed to 40 in SegLSTM.__init__)
LANE = 128       # TPU lane width; gate / hidden / head dims are padded to this


def _round_up(x, m):
    return (x + m - 1) // m * m


# ----------------------------------------------------------------------------
# Fused kernel: scale-divide + hoisted input projection + LSTM recurrence
#               + fused Linear head + rescale, one lane-dense output store.
# ----------------------------------------------------------------------------
def _seglstm_kernel(x_ref, iscale_ref, wih_ref, whh_ref, b_ref,
                    wout_ref, bout_ref, oscale_ref, o_ref, xw_sc, hall_sc):
    T_seg, Bt, D = x_ref.shape
    HP, G = whh_ref.shape            # 128, 512 (gate-padded)
    DOP = wout_ref.shape[1]          # 128 (lane-padded head output)

    # --- X / target_scale folded in: one approx EUP reciprocal, broadcast multiply
    inv = pl.reciprocal(iscale_ref[...], approx=True)            # (Bt, D) f32
    x = x_ref[...] * inv[None, :, :]                             # (T_seg, Bt, D) f32

    # --- hoisted input projection: ONE MXU matmul over all (t, b) rows, bias folded in.
    #     x is time-major, so the result drops into the scratch with a single contiguous store.
    x2 = x.reshape(T_seg * Bt, D).astype(wih_ref.dtype)          # bf16 operand
    xw = (jnp.dot(x2, wih_ref[...], preferred_element_type=jnp.float32)
          + b_ref[...])                                          # (T_seg*Bt, G) f32
    xw_sc[...] = xw.reshape(T_seg, Bt, G)

    # --- serial recurrence: h @ W_hh (Bt, 128) @ (128, 512) + f32 elementwise gates per step.
    #     Gate k lives in lanes [k*128, (k+1)*128) -> slices are lane-aligned vreg extractions.
    h0 = jnp.zeros((Bt, HP), jnp.float32)
    c0 = jnp.zeros((Bt, HP), jnp.float32)

    def step(s, carry):
        h, c = carry
        g = xw_sc[s] + jnp.dot(h.astype(whh_ref.dtype), whh_ref[...],
                               preferred_element_type=jnp.float32)       # (Bt, G) f32
        # PyTorch LSTM gate order: i, f, g, o (128-lane blocks of the fused weights)
        i_g = jax.nn.sigmoid(g[:, 0 * HP:1 * HP])
        f_g = jax.nn.sigmoid(g[:, 1 * HP:2 * HP])
        g_g = jnp.tanh(g[:, 2 * HP:3 * HP])
        o_g = jax.nn.sigmoid(g[:, 3 * HP:4 * HP])
        c_new = f_g * c + i_g * g_g
        h_new = o_g * jnp.tanh(c_new)
        hall_sc[s] = h_new
        return h_new, c_new

    jax.lax.fori_loop(0, T_seg, step, (h0, c0), unroll=2)

    # --- fused distribution head: one matmul over all (t, b) rows, rescale, one lane-dense store
    h_all = hall_sc[...].reshape(T_seg * Bt, HP).astype(wout_ref.dtype)
    y = (jnp.dot(h_all, wout_ref[...], preferred_element_type=jnp.float32)
         + bout_ref[...])                                        # (T_seg*Bt, DOP) f32
    y3 = y.reshape(T_seg, Bt, DOP) * oscale_ref[...][None, :, :]
    o_ref[...] = y3.astype(o_ref.dtype)


# ----------------------------------------------------------------------------
# Parameter init / packing into lane-aligned fused TPU layouts
# ----------------------------------------------------------------------------
def pack_params(w_ih, w_hh, b_ih, b_hh, w_lin, b_lin, mxu_dtype=jnp.bfloat16):
    """PyTorch-layout LSTM (gates [i|f|g|o]) + Linear -> gate-padded fused TPU layouts."""
    fourH, Din = w_ih.shape
    H = fourH // 4
    Dout = w_lin.shape[0]
    HP = _round_up(H, LANE)            # 128
    DOP = _round_up(Dout, LANE)        # 128
    G = 4 * HP                         # 512

    w_ih_f = jnp.zeros((Din, G), jnp.float32)
    w_hh_f = jnp.zeros((HP, G), jnp.float32)
    b_f = jnp.zeros((1, G), jnp.float32)
    b_sum = b_ih + b_hh
    for k in range(4):
        w_ih_f = w_ih_f.at[:, k * HP:k * HP + H].set(w_ih[k * H:(k + 1) * H, :].T)
        w_hh_f = w_hh_f.at[:H, k * HP:k * HP + H].set(w_hh[k * H:(k + 1) * H, :].T)
        b_f = b_f.at[0, k * HP:k * HP + H].set(b_sum[k * H:(k + 1) * H])

    w_out = jnp.zeros((HP, DOP), jnp.float32).at[:H, :Dout].set(w_lin.T)
    b_out = jnp.zeros((1, DOP), jnp.float32).at[0, :Dout].set(b_lin)

    return (w_ih_f.astype(mxu_dtype), w_hh_f.astype(mxu_dtype), b_f,
            w_out.astype(mxu_dtype), b_out)


def init_params(key, input_dim, hidden_dim, out_dim, mxu_dtype=jnp.bfloat16):
    k_ih, k_hh, k_bih, k_bhh, k_w, k_b = jax.random.split(key, 6)
    bound = 1.0 / jnp.sqrt(hidden_dim)
    # PyTorch LSTM layout: weight_ih (4H, D), weight_hh (4H, H), biases (4H,)
    w_ih = jax.random.uniform(k_ih, (4 * hidden_dim, input_dim), jnp.float32, -bound, bound)
    w_hh = jax.random.uniform(k_hh, (4 * hidden_dim, hidden_dim), jnp.float32, -bound, bound)
    b_ih = jax.random.uniform(k_bih, (4 * hidden_dim,), jnp.float32, -bound, bound)
    b_hh = jax.random.uniform(k_bhh, (4 * hidden_dim,), jnp.float32, -bound, bound)
    lb = 1.0 / jnp.sqrt(hidden_dim)
    w_lin = jax.random.uniform(k_w, (out_dim, hidden_dim), jnp.float32, -lb, lb)
    b_lin = jax.random.uniform(k_b, (out_dim,), jnp.float32, -lb, lb)
    return pack_params(w_ih, w_hh, b_ih, b_hh, w_lin, b_lin, mxu_dtype)


# ----------------------------------------------------------------------------
# Forward wrapper
# ----------------------------------------------------------------------------
def seglstm_forward(X, pad_mask, params, *, b_tile=None):
    """X: (B, T, C), pad_mask: (B, T) -> (B, T//SEG, SEG, C)"""
    B, T, C = X.shape
    T_seg = T // SEG
    D = SEG * C
    w_ih, w_hh, b_g, w_out, b_out = params
    HP, G = w_hh.shape
    DOP = w_out.shape[1]
    assert w_ih.shape[0] == D and DOP >= D  # point-estimate head: out_dim == SEG * C

    # masked mean-|x| scaling_fn in plain jnp (tiny reduction; XLA fuses it)
    m = pad_mask.astype(X.dtype)
    num = jnp.sum(jnp.abs(X) * m[..., None], axis=1)                 # (B, C)
    den = jnp.maximum(jnp.sum(m, axis=1, keepdims=True), 1.0)        # (B, 1)
    target_scale = jnp.maximum(num / den, 1e-10)                     # (B, C)
    scale_feat = jnp.tile(target_scale, (1, SEG))                    # (B, D): feature j -> channel j % C
    oscale = jnp.pad(scale_feat, ((0, 0), (0, DOP - D)), constant_values=1.0)   # (B, DOP)

    # time-major input so the hoisted projection fills the recurrence scratch in one store
    x_tm = jnp.transpose(X.reshape(B, T_seg, D), (1, 0, 2))          # (T_seg, B, D)

    if b_tile is None:
        b_tile = B if B <= 8 else 8
    if B % b_tile != 0:
        b_tile = B
    n_b = B // b_tile

    out = pl.pallas_call(
        _seglstm_kernel,
        out_shape=jax.ShapeDtypeStruct((T_seg, B, DOP), X.dtype),
        grid=(n_b,),
        in_specs=[
            pl.BlockSpec((T_seg, b_tile, D), lambda i: (0, i, 0)),   # x (time-major)
            pl.BlockSpec((b_tile, D), lambda i: (i, 0)),             # input target_scale
            pl.BlockSpec(w_ih.shape, lambda i: (0, 0)),              # fused W_ih (D, 512) bf16
            pl.BlockSpec(w_hh.shape, lambda i: (0, 0)),              # fused W_hh (128, 512) bf16
            pl.BlockSpec(b_g.shape, lambda i: (0, 0)),               # fused bias (1, 512)
            pl.BlockSpec(w_out.shape, lambda i: (0, 0)),             # head weight (128, 128) bf16
            pl.BlockSpec(b_out.shape, lambda i: (0, 0)),             # head bias (1, 128)
            pl.BlockSpec((b_tile, DOP), lambda i: (i, 0)),           # output rescale slab
        ],
        out_specs=pl.BlockSpec((T_seg, b_tile, DOP), lambda i: (0, i, 0)),
        scratch_shapes=[pltpu.VMEM((T_seg, b_tile, G), jnp.float32),    # hoisted XW (time-major)
                        pltpu.VMEM((T_seg, b_tile, HP), jnp.float32)],  # all hidden states
        compiler_params=pltpu.CompilerParams(
            dimension_semantics=("parallel",)),
    )(x_tm, scale_feat, w_ih, w_hh, b_g, w_out, b_out, oscale)

    out = jnp.transpose(out, (1, 0, 2))[:, :, :D]                    # un-pad + batch-major
    return out.reshape(B, T_seg, SEG, C)


# ----------------------------------------------------------------------------
# Pure-JAX reference (same packed params, f32 everywhere) for a sanity check
# ----------------------------------------------------------------------------
def _seglstm_reference(X, pad_mask, params):
    w_ih, w_hh, b_g, w_out, b_out = [p.astype(jnp.float32) for p in params]
    B, T, C = X.shape
    T_seg = T // SEG
    D = SEG * C
    HP = w_hh.shape[0]
    m = pad_mask.astype(X.dtype)
    num = jnp.sum(jnp.abs(X) * m[..., None], axis=1)
    den = jnp.maximum(jnp.sum(m, axis=1, keepdims=True), 1.0)
    ts = jnp.maximum(num / den, 1e-10)
    sf = jnp.tile(ts, (1, SEG))                                      # (B, D)
    x = X.reshape(B, T_seg, D) / sf[:, None, :]
    xw = jnp.einsum('btd,dg->btg', x, w_ih) + b_g[0]
    h = jnp.zeros((B, HP), jnp.float32)
    c = jnp.zeros((B, HP), jnp.float32)
    hs = []
    for s in range(T_seg):
        g = xw[:, s, :] + h @ w_hh
        i_g = jax.nn.sigmoid(g[:, 0 * HP:1 * HP])
        f_g = jax.nn.sigmoid(g[:, 1 * HP:2 * HP])
        g_g = jnp.tanh(g[:, 2 * HP:3 * HP])
        o_g = jax.nn.sigmoid(g[:, 3 * HP:4 * HP])
        c = f_g * c + i_g * g_g
        h = o_g * jnp.tanh(c)
        hs.append(h)
    hall = jnp.stack(hs, axis=1)                                     # (B, T_seg, HP)
    y = jnp.einsum('bth,hd->btd', hall, w_out) + b_out[0]
    y = y[..., :D] * sf[:, None, :]
    return y.reshape(B, T_seg, SEG, C)


if __name__ == "__main__":
    key = jax.random.PRNGKey(0)
    kx, kp = jax.random.split(key)

    B, T, C = 2, 16, 4                  # T must be a multiple of SEG
    D = SEG * C                         # LSTM input_dim = segment_length * output_dim = 32
    X = jax.random.normal(kx, (B, T, C), jnp.float32)
    pad_mask = jnp.ones((B, T), jnp.float32)

    params = init_params(kp, D, HIDDEN, D)

    out = jax.jit(seglstm_forward)(X, pad_mask, params)
    jax.block_until_ready(out)
    assert out.shape == (B, T // SEG, SEG, C), out.shape
    assert bool(jnp.all(jnp.isfinite(out)))

    ref = _seglstm_reference(X, pad_mask, params)
    err = float(jnp.max(jnp.abs(out - ref)))
    assert err < 5e-2, f"max |kernel - reference| = {err}"
    print("KERNEL_OK")
</pallas_src>

<mosaic_0001>
module attributes {stable_mosaic.version = 11 : i64} {
  func.func @_seglstm_kernel(%arg0: i32, %arg1: memref<2x2x32xf32, #tpu.memory_space<vmem>>, %arg2: memref<2x32xf32, #tpu.memory_space<vmem>>, %arg3: memref<32x512xbf16, #tpu.memory_space<vmem>>, %arg4: memref<128x512xbf16, #tpu.memory_space<vmem>>, %arg5: memref<1x512xf32, #tpu.memory_space<vmem>>, %arg6: memref<128x128xbf16, #tpu.memory_space<vmem>>, %arg7: memref<1x128xf32, #tpu.memory_space<vmem>>, %arg8: memref<2x128xf32, #tpu.memory_space<vmem>>, %arg9: memref<2x2x128xf32, #tpu.memory_space<vmem>>, %arg10: memref<2x2x512xf32, #tpu.memory_space<vmem>>, %arg11: memref<2x2x128xf32, #tpu.memory_space<vmem>>) attributes {dimension_semantics = [#tpu.dimension_semantics<parallel>], iteration_bounds = array<i64: 1>, scalar_prefetch = 0 : i64, scratch_operands = 2 : i64, tpu.core_type = #tpu.core_type<tc>, window_params = [{transform_indices = @transform_0, window_bounds = array<i64: 2, 2, 32>}, {transform_indices = @transform_1, window_bounds = array<i64: 2, 32>}, {pipeline_mode = #tpu.pipeline_mode<synchronous>, transform_indices = @transform_2, window_bounds = array<i64: 32, 512>}, {pipeline_mode = #tpu.pipeline_mode<synchronous>, transform_indices = @transform_3, window_bounds = array<i64: 128, 512>}, {pipeline_mode = #tpu.pipeline_mode<synchronous>, transform_indices = @transform_4, window_bounds = array<i64: 1, 512>}, {pipeline_mode = #tpu.pipeline_mode<synchronous>, transform_indices = @transform_5, window_bounds = array<i64: 128, 128>}, {pipeline_mode = #tpu.pipeline_mode<synchronous>, transform_indices = @transform_6, window_bounds = array<i64: 1, 128>}, {transform_indices = @transform_7, window_bounds = array<i64: 2, 128>}, {transform_indices = @transform_8, window_bounds = array<i64: 2, 2, 128>}]} {
    %c0 = arith.constant 0 : index
    %c0_0 = arith.constant 0 : index
    %0 = vector.load %arg2[%c0, %c0_0] : memref<2x32xf32, #tpu.memory_space<vmem>>, vector<2x32xf32>
    %1 = tpu.reciprocal %0 {approx = true} : vector<2x32xf32> -> vector<2x32xf32>
    %c0_1 = arith.constant 0 : index
    %c0_2 = arith.constant 0 : index
    %c0_3 = arith.constant 0 : index
    %2 = vector.load %arg1[%c0_1, %c0_2, %c0_3] : memref<2x2x32xf32, #tpu.memory_space<vmem>>, vector<2x2x32xf32>
    %3 = vector.shape_cast %1 : vector<2x32xf32> to vector<1x2x32xf32>
    %4 = vector.broadcast %3 : vector<1x2x32xf32> to vector<2x2x32xf32>
    %5 = arith.mulf %2, %4 : vector<2x2x32xf32>
    %6 = vector.shape_cast %5 : vector<2x2x32xf32> to vector<4x32xf32>
    %7 = arith.truncf %6 : vector<4x32xf32> to vector<4x32xbf16>
    %c0_4 = arith.constant 0 : index
    %c0_5 = arith.constant 0 : index
    %8 = vector.load %arg3[%c0_4, %c0_5] : memref<32x512xbf16, #tpu.memory_space<vmem>>, vector<32x512xbf16>
    %cst = arith.constant dense<0.000000e+00> : vector<4x512xf32>
    %9 = tpu.matmul %7, %8, %cst {dimension_numbers = #tpu.dot_dimension_numbers<[1], [0], [0], [1], [0, 0, 1, 1], [], []>} : vector<4x32xbf16>, vector<32x512xbf16>, vector<4x512xf32> -> vector<4x512xf32>
    %c0_6 = arith.constant 0 : index
    %c0_7 = arith.constant 0 : index
    %10 = vector.load %arg5[%c0_6, %c0_7] : memref<1x512xf32, #tpu.memory_space<vmem>>, vector<1x512xf32>
    %11 = vector.broadcast %10 : vector<1x512xf32> to vector<4x512xf32>
    %12 = arith.addf %9, %11 : vector<4x512xf32>
    %13 = vector.shape_cast %12 : vector<4x512xf32> to vector<2x2x512xf32>
    %c0_8 = arith.constant 0 : index
    %c0_9 = arith.constant 0 : index
    %c0_10 = arith.constant 0 : index
    %14 = vector.load %arg10[%c0_8, %c0_9, %c0_10] : memref<2x2x512xf32, #tpu.memory_space<vmem>>, vector<2x2x512xf32>
    tpu.vector_store %arg10[%c0_8, %c0_9, %c0_10], %13 {strides = array<i32>} : memref<2x2x512xf32, #tpu.memory_space<vmem>>, vector<2x2x512xf32>,
    %cst_11 = arith.constant 0.000000e+00 : f32
    %15 = vector.broadcast %cst_11 : f32 to vector<2x128xf32>
    %cst_12 = arith.constant 0.000000e+00 : f32
    %16 = vector.broadcast %cst_12 : f32 to vector<2x128xf32>
    %c0_i32 = arith.constant 0 : i32
    %17 = arith.index_cast %c0_i32 : i32 to index
    %c0_13 = arith.constant 0 : index
    %c0_14 = arith.constant 0 : index
    %18 = vector.load %arg10[%17, %c0_13, %c0_14] : memref<2x2x512xf32, #tpu.memory_space<vmem>>, vector<1x2x512xf32>
    %19 = vector.shape_cast %18 : vector<1x2x512xf32> to vector<2x512xf32>
    %20 = arith.truncf %15 : vector<2x128xf32> to vector<2x128xbf16>
    %c0_15 = arith.constant 0 : index
    %c0_16 = arith.constant 0 : index
    %21 = vector.load %arg4[%c0_15, %c0_16] : memref<128x512xbf16, #tpu.memory_space<vmem>>, vector<128x512xbf16>
    %cst_17 = arith.constant dense<0.000000e+00> : vector<2x512xf32>
    %22 = tpu.matmul %20, %21, %cst_17 {dimension_numbers = #tpu.dot_dimension_numbers<[1], [0], [0], [1], [0, 0, 1, 1], [], []>} : vector<2x128xbf16>, vector<128x512xbf16>, vector<2x512xf32> -> vector<2x512xf32>
    %23 = arith.addf %19, %22 : vector<2x512xf32>
    %24 = vector.extract_strided_slice %23 {offsets = [0, 0], sizes = [2, 128], strides = [1, 1]} : vector<2x512xf32> to vector<2x128xf32>
    %25 = arith.negf %24 : vector<2x128xf32>
    %26 = math.exp %25 : vector<2x128xf32>
    %cst_18 = arith.constant 1.000000e+00 : f32
    %27 = vector.broadcast %cst_18 : f32 to vector<2x128xf32>
    %28 = arith.addf %27, %26 : vector<2x128xf32>
    %29 = arith.divf %27, %28 : vector<2x128xf32>
    %30 = vector.extract_strided_slice %23 {offsets = [0, 128], sizes = [2, 128], strides = [1, 1]} : vector<2x512xf32> to vector<2x128xf32>
    %31 = arith.negf %30 : vector<2x128xf32>
    %32 = math.exp %31 : vector<2x128xf32>
    %cst_19 = arith.constant 1.000000e+00 : f32
    %33 = vector.broadcast %cst_19 : f32 to vector<2x128xf32>
    %34 = arith.addf %33, %32 : vector<2x128xf32>
    %35 = arith.divf %33, %34 : vector<2x128xf32>
    %36 = vector.extract_strided_slice %23 {offsets = [0, 256], sizes = [2, 128], strides = [1, 1]} : vector<2x512xf32> to vector<2x128xf32>
    %37 = math.tanh %36 : vector<2x128xf32>
    %38 = vector.extract_strided_slice %23 {offsets = [0, 384], sizes = [2, 128], strides = [1, 1]} : vector<2x512xf32> to vector<2x128xf32>
    %39 = arith.negf %38 : vector<2x128xf32>
    %40 = math.exp %39 : vector<2x128xf32>
    %cst_20 = arith.constant 1.000000e+00 : f32
    %41 = vector.broadcast %cst_20 : f32 to vector<2x128xf32>
    %42 = arith.addf %41, %40 : vector<2x128xf32>
    %43 = arith.divf %41, %42 : vector<2x128xf32>
    %44 = arith.mulf %35, %16 : vector<2x128xf32>
    %45 = arith.mulf %29, %37 : vector<2x128xf32>
    %46 = arith.addf %44, %45 : vector<2x128xf32>
    %47 = math.tanh %46 : vector<2x128xf32>
    %48 = arith.mulf %43, %47 : vector<2x128xf32>
    %49 = arith.index_cast %c0_i32 : i32 to index
    %c0_21 = arith.constant 0 : index
    %c0_22 = arith.constant 0 : index
    %50 = vector.load %arg11[%49, %c0_21, %c0_22] : memref<2x2x128xf32, #tpu.memory_space<vmem>>, vector<1x2x128xf32>
    %51 = vector.shape_cast %50 : vector<1x2x128xf32> to vector<2x128xf32>
    %52 = vector.shape_cast %48 : vector<2x128xf32> to vector<1x2x128xf32>
    tpu.vector_store %arg11[%49, %c0_21, %c0_22], %52 {strides = array<i32>} : memref<2x2x128xf32, #tpu.memory_space<vmem>>, vector<1x2x128xf32>,
    %c1_i32 = arith.constant 1 : i32
    %53 = arith.index_cast %c1_i32 : i32 to index
    %c0_23 = arith.constant 0 : index
    %c0_24 = arith.constant 0 : index
    %54 = vector.load %arg10[%53, %c0_23, %c0_24] : memref<2x2x512xf32, #tpu.memory_space<vmem>>, vector<1x2x512xf32>
    %55 = vector.shape_cast %54 : vector<1x2x512xf32> to vector<2x512xf32>
    %56 = arith.truncf %48 : vector<2x128xf32> to vector<2x128xbf16>
    %c0_25 = arith.constant 0 : index
    %c0_26 = arith.constant 0 : index
    %57 = vector.load %arg4[%c0_25, %c0_26] : memref<128x512xbf16, #tpu.memory_space<vmem>>, vector<128x512xbf16>
    %cst_27 = arith.constant dense<0.000000e+00> : vector<2x512xf32>
    %58 = tpu.matmul %56, %57, %cst_27 {dimension_numbers = #tpu.dot_dimension_numbers<[1], [0], [0], [1], [0, 0, 1, 1], [], []>} : vector<2x128xbf16>, vector<128x512xbf16>, vector<2x512xf32> -> vector<2x512xf32>
    %59 = arith.addf %55, %58 : vector<2x512xf32>
    %60 = vector.extract_strided_slice %59 {offsets = [0, 0], sizes = [2, 128], strides = [1, 1]} : vector<2x512xf32> to vector<2x128xf32>
    %61 = arith.negf %60 : vector<2x128xf32>
    %62 = math.exp %61 : vector<2x128xf32>
    %cst_28 = arith.constant 1.000000e+00 : f32
    %63 = vector.broadcast %cst_28 : f32 to vector<2x128xf32>
    %64 = arith.addf %63, %62 : vector<2x128xf32>
    %65 = arith.divf %63, %64 : vector<2x128xf32>
    %66 = vector.extract_strided_slice %59 {offsets = [0, 128], sizes = [2, 128], strides = [1, 1]} : vector<2x512xf32> to vector<2x128xf32>
    %67 = arith.negf %66 : vector<2x128xf32>
    %68 = math.exp %67 : vector<2x128xf32>
    %cst_29 = arith.constant 1.000000e+00 : f32
    %69 = vector.broadcast %cst_29 : f32 to vector<2x128xf32>
    %70 = arith.addf %69, %68 : vector<2x128xf32>
    %71 = arith.divf %69, %70 : vector<2x128xf32>
    %72 = vector.extract_strided_slice %59 {offsets = [0, 256], sizes = [2, 128], strides = [1, 1]} : vector<2x512xf32> to vector<2x128xf32>
    %73 = math.tanh %72 : vector<2x128xf32>
    %74 = vector.extract_strided_slice %59 {offsets = [0, 384], sizes = [2, 128], strides = [1, 1]} : vector<2x512xf32> to vector<2x128xf32>
    %75 = arith.negf %74 : vector<2x128xf32>
    %76 = math.exp %75 : vector<2x128xf32>
    %cst_30 = arith.constant 1.000000e+00 : f32
    %77 = vector.broadcast %cst_30 : f32 to vector<2x128xf32>
    %78 = arith.addf %77, %76 : vector<2x128xf32>
    %79 = arith.divf %77, %78 : vector<2x128xf32>
    %80 = arith.mulf %71, %46 : vector<2x128xf32>
    %81 = arith.mulf %65, %73 : vector<2x128xf32>
    %82 = arith.addf %80, %81 : vector<2x128xf32>
    %83 = math.tanh %82 : vector<2x128xf32>
    %84 = arith.mulf %79, %83 : vector<2x128xf32>
    %85 = arith.index_cast %c1_i32 : i32 to index
    %c0_31 = arith.constant 0 : index
    %c0_32 = arith.constant 0 : index
    %86 = vector.load %arg11[%85, %c0_31, %c0_32] : memref<2x2x128xf32, #tpu.memory_space<vmem>>, vector<1x2x128xf32>
    %87 = vector.shape_cast %86 : vector<1x2x128xf32> to vector<2x128xf32>
    %88 = vector.shape_cast %84 : vector<2x128xf32> to vector<1x2x128xf32>
    tpu.vector_store %arg11[%85, %c0_31, %c0_32], %88 {strides = array<i32>} : memref<2x2x128xf32, #tpu.memory_space<vmem>>, vector<1x2x128xf32>,
    %c2_i32 = arith.constant 2 : i32
    %c0_33 = arith.constant 0 : index
    %c0_34 = arith.constant 0 : index
    %c0_35 = arith.constant 0 : index
    %89 = vector.load %arg11[%c0_33, %c0_34, %c0_35] : memref<2x2x128xf32, #tpu.memory_space<vmem>>, vector<2x2x128xf32>
    %90 = vector.shape_cast %89 : vector<2x2x128xf32> to vector<4x128xf32>
    %91 = arith.truncf %90 : vector<4x128xf32> to vector<4x128xbf16>
    %c0_36 = arith.constant 0 : index
    %c0_37 = arith.constant 0 : index
    %92 = vector.load %arg6[%c0_36, %c0_37] : memref<128x128xbf16, #tpu.memory_space<vmem>>, vector<128x128xbf16>
    %cst_38 = arith.constant dense<0.000000e+00> : vector<4x128xf32>
    %93 = tpu.matmul %91, %92, %cst_38 {dimension_numbers = #tpu.dot_dimension_numbers<[1], [0], [0], [1], [0, 0, 1, 1], [], []>} : vector<4x128xbf16>, vector<128x128xbf16>, vector<4x128xf32> -> vector<4x128xf32>
    %c0_39 = arith.constant 0 : index
    %c0_40 = arith.constant 0 : index
    %94 = vector.load %arg7[%c0_39, %c0_40] : memref<1x128xf32, #tpu.memory_space<vmem>>, vector<1x128xf32>
    %95 = vector.broadcast %94 : vector<1x128xf32> to vector<4x128xf32>
    %96 = arith.addf %93, %95 : vector<4x128xf32>
    %97 = vector.shape_cast %96 : vector<4x128xf32> to vector<2x2x128xf32>
    %c0_41 = arith.constant 0 : index
    %c0_42 = arith.constant 0 : index
    %98 = vector.load %arg8[%c0_41, %c0_42] : memref<2x128xf32, #tpu.memory_space<vmem>>, vector<2x128xf32>
    %99 = vector.shape_cast %98 : vector<2x128xf32> to vector<1x2x128xf32>
    %100 = vector.broadcast %99 : vector<1x2x128xf32> to vector<2x2x128xf32>
    %101 = arith.mulf %97, %100 : vector<2x2x128xf32>
    %c0_43 = arith.constant 0 : index
    %c0_44 = arith.constant 0 : index
    %c0_45 = arith.constant 0 : index
    %102 = vector.load %arg9[%c0_43, %c0_44, %c0_45] : memref<2x2x128xf32, #tpu.memory_space<vmem>>, vector<2x2x128xf32>
    tpu.vector_store %arg9[%c0_43, %c0_44, %c0_45], %101 {strides = array<i32>} : memref<2x2x128xf32, #tpu.memory_space<vmem>>, vector<2x2x128xf32>,
    return
  }
  func.func @transform_0(%arg0: i32) -> (i32, i32, i32) {
    %c0_i32 = arith.constant 0 : i32
    %c0_i32_0 = arith.constant 0 : i32
    %c0_i32_1 = arith.constant 0 : i32
    return %c0_i32, %arg0, %c0_i32_0 : i32, i32, i32
  }
  func.func @transform_1(%arg0: i32) -> (i32, i32) {
    %c0_i32 = arith.constant 0 : i32
    %c0_i32_0 = arith.constant 0 : i32
    return %arg0, %c0_i32 : i32, i32
  }
  func.func @transform_2(%arg0: i32) -> (i32, i32) {
    %c0_i32 = arith.constant 0 : i32
    %c0_i32_0 = arith.constant 0 : i32
    %c0_i32_1 = arith.constant 0 : i32
    return %c0_i32, %c0_i32_0 : i32, i32
  }
  func.func @transform_3(%arg0: i32) -> (i32, i32) {
    %c0_i32 = arith.constant 0 : i32
    %c0_i32_0 = arith.constant 0 : i32
    %c0_i32_1 = arith.constant 0 : i32
    return %c0_i32, %c0_i32_0 : i32, i32
  }
  func.func @transform_4(%arg0: i32) -> (i32, i32) {
    %c0_i32 = arith.constant 0 : i32
    %c0_i32_0 = arith.constant 0 : i32
    %c0_i32_1 = arith.constant 0 : i32
    return %c0_i32, %c0_i32_0 : i32, i32
  }
  func.func @transform_5(%arg0: i32) -> (i32, i32) {
    %c0_i32 = arith.constant 0 : i32
    %c0_i32_0 = arith.constant 0 : i32
    %c0_i32_1 = arith.constant 0 : i32
    return %c0_i32, %c0_i32_0 : i32, i32
  }
  func.func @transform_6(%arg0: i32) -> (i32, i32) {
    %c0_i32 = arith.constant 0 : i32
    %c0_i32_0 = arith.constant 0 : i32
    %c0_i32_1 = arith.constant 0 : i32
    return %c0_i32, %c0_i32_0 : i32, i32
  }
  func.func @transform_7(%arg0: i32) -> (i32, i32) {
    %c0_i32 = arith.constant 0 : i32
    %c0_i32_0 = arith.constant 0 : i32
    return %arg0, %c0_i32 : i32, i32
  }
  func.func @transform_8(%arg0: i32) -> (i32, i32, i32) {
    %c0_i32 = arith.constant 0 : i32
    %c0_i32_0 = arith.constant 0 : i32
    %c0_i32_1 = arith.constant 0 : i32
    return %c0_i32, %arg0, %c0_i32_0 : i32, i32, i32
  }
}

</mosaic_0001>

<bundles_post_ra>
// kernel: tile.9
= control target key start
LH: loop header
LB: loop body
LE: loop exit
PB: predicated region body
PF: predicated region fallthrough
CT: control target
= control target key end

     0   :  { %s7_s6 = smov 3  ;;  %s21_s9 = smov 3  ;;  %vm4_vm0 = vcmask 31744   ;;  %vm11_vm1 = vcmask 261344   ;;  %vm18_vm2 = vcmask 228544   ;;  %vm25_vm3 = vcmask 195744   ;;  %s119_s0 = inlined_call_operand.vmem [shape: f32[2,8,4], index: 0, kind: input, shape index: {}]   ;;  %s120_s1 = inlined_call_operand.vmem [shape: f32[2,32], index: 1, kind: output, shape index: {}]  }
   0x1   :  { %v61_v0 = vld [vmem:[%s119_s0 + $0x7] ss:$8 sm:%s7_s6]   ;;  %s75_s10 = smov 28   ;;  %v63_v1 = vld [vmem:[%s119_s0 + $0x5] ss:$8 sm:%s21_s9]   ;;  %s14_s13 = smov 3 }
   0x2   :  { %9 = vrot.lane.b32.xlu0 %v61_v0, %s75_s10  ;;  %s76_s14 = smov 20   ;;  %v62_v2 = vld [vmem:[%s119_s0 + $0x6] ss:$8 sm:%s14_s13]   ;;  %s28_s17 = smov 3  ;;  %vm32_vm4 = vcmask 162944   ;;  %vm39_vm5 = vcmask 130144  }
   0x3   :  { %23 = vrot.lane.b32.xlu1 %v63_v1, %s76_s14  ;;  %v64_v3 = vld [vmem:[%s119_s0 + $0x4] ss:$8 sm:%s28_s17]   ;;  %s35_s20 = smov 3  ;;  %s42_s21 = smov 3  ;;  %vm46_vm6 = vcmask 97344   ;;  %vm53_vm7 = vcmask 64544  }
   0x4   :  { %s77_s22 = smov 24   ;;  %s78_s23 = smov 16   ;;  %v65_v4 = vld [vmem:[%s119_s0 + $0x3] ss:$8 sm:%s35_s20]   ;;  %v66_v5 = vld [vmem:[%s119_s0 + $0x2] ss:$8 sm:%s42_s21]  }
   0x5   :  { %s2_s26 = smov 3  ;;  %s49_s29 = smov 3 }
   0x6   :  { %16 = vrot.lane.b32.xlu0 %v62_v2, %s77_s22  ;;  %v3_v6 = vld [vmem:[%s119_s0] ss:$8 sm:%s2_s26]   ;;  %s79_s3 = smov 12   ;;  %s80_s4 = smov 8  }
   0x7   :  { %30 = vrot.lane.b32.xlu1 %v64_v3, %s78_s23  ;;  %5 = vst.msk [vmem:[#allocation0] sm:$0x3] %vm4_vm0, %v3_v6   ;;  %v67_v7 = vld [vmem:[%s119_s0 + $0x1] ss:$8 sm:%s49_s29]   ;;  %s81_s0 = smov 4  }
   0xa   :  { %37 = vrot.lane.b32.xlu0 %v65_v4, %s79_s3 }
   0xb   :  { %44 = vrot.lane.b32.xlu1 %v66_v5, %s80_s4 }
   0xe   :  { %51 = vrot.lane.b32.xlu0 %v67_v7, %s81_s0 }
  0x74   :  { %v10_v8 = vpop.permute.xlu0 %9  }
  0x75   :  { %12 = vst.msk [vmem:[#allocation0] sm:$0x3] %vm11_vm1, %v10_v8   ;;  %v24_v9 = vpop.permute.xlu1 %23  }
  0x78   :  { %v17_v10 = vpop.permute.xlu0 %16  }
  0x79   :  { %19 = vst.msk [vmem:[#allocation0] sm:$0x3] %vm18_vm2, %v17_v10   ;;  %v31_v11 = vpop.permute.xlu1 %30  }
  0x7a   :  { %26 = vst.msk [vmem:[#allocation0] sm:$0x3] %vm25_vm3, %v24_v9  }
  0x7b   :  { %33 = vst.msk [vmem:[#allocation0] sm:$0x3] %vm32_vm4, %v31_v11  }
  0x7c   :  { %v38_v12 = vpop.permute.xlu0 %37  }
  0x7d   :  { %40 = vst.msk [vmem:[#allocation0] sm:$0x3] %vm39_vm5, %v38_v12   ;;  %v45_v13 = vpop.permute.xlu1 %44  }
  0x7e   :  { %47 = vst.msk [vmem:[#allocation0] sm:$0x3] %vm46_vm6, %v45_v13  }
  0x80   :  { %v52_v14 = vpop.permute.xlu0 %51  }
  0x81   :  { %54 = vst.msk [vmem:[#allocation0] sm:$0x3] %vm53_vm7, %v52_v14  }
  0x88   :  { %v58_v15 = vld [vmem:[#allocation0] sm:$0x3] }
  0x89   :  { %60 = vst [vmem:[%s120_s1] sm:$0x3] %v58_v15 }

// kernel: seglstm_forward.1
= control target key start
LH: loop header
LB: loop body
LE: loop exit
PB: predicated region body
PF: predicated region fallthrough
CT: control target
= control target key end

     0   :  { %13 = vsyncpa [#allocation5], 0  ;;  %s1304_s27 = smov [#allocation4]   ;;  %s1527_s0 = inlined_call_operand.vmem [shape: f32[2,2,32], index: 0, kind: input, shape index: {}]   ;;  %s1528_s1 = inlined_call_operand.vmem [shape: f32[2,32], index: 1, kind: input, shape index: {}]   ;;  %s1529_s2 = inlined_call_operand.vmem [shape: bf16[32,512], index: 2, kind: input, shape index: {}]   ;;  %s1530_s3 = inlined_call_operand.hbm [shape: bf16[128,512], index: 3, kind: input, shape index: {}]   ;;  %s1531_s4 = inlined_call_operand.vmem [shape: f32[1,512], index: 4, kind: input, shape index: {}]   ;;  %s1532_s5 = inlined_call_operand.vmem [shape: bf16[128,128], index: 5, kind: input, shape index: {}]   ;;  %s1533_s6 = inlined_call_operand.vmem [shape: f32[1,128], index: 6, kind: input, shape index: {}]   ;;  %s1534_s7 = inlined_call_operand.vmem [shape: f32[2,128], index: 7, kind: input, shape index: {}]   ;;  %s1535_s8 = inlined_call_operand.vmem [shape: f32[2,2,128], index: 8, kind: output, shape index: {}]  }
   0x1   :  { %s25_s28 = sshll.u32 %s1304_s27, 4  ;;  %s1280_s9 = scalar_lea.hbm %s1530_s3, 4096  ;;  %s26_s28 = int_to_ptr.vmem [resolvable:$true] %s25_s28 }
   0x2   :  { %p1281_p0 = scmp.ne.s32.totalorder %s1530_s3, %s1280_s9  ;;  %p1284_p1 = scmp.lt.u32.totalorder %s1280_s9, %s1530_s3 }
   0x4   :  { %p1286_p2 = pnand %p1284_p1, %p1281_p0 }
   0x6   :  { %1289 = shalt.err (!%p1286_p2)
}
   0x7   :  { %s1290_s14 = scalar_lea.vmem %s26_s28, 4096  ;;  %p1295_p4 = scmp.lt.s32.totalorder %s26_s28, %s26_s28 }
   0x8   :  { %p1291_p3 = scmp.ne.s32.totalorder %s26_s28, %s1290_s14  ;;  %p1296_p5 = scmp.lt.s32.totalorder %s1290_s14, %s1290_s14 }
   0xa   :  { %p1297_p6 = por %p1296_p5, %p1295_p4 }
   0xc   :  { %p1298_p7 = pnand %p1297_p6, %p1291_p3 }
   0xe   :  { %1301 = shalt.err (!%p1298_p7)
}
   0xf   :  { %s1305_s15 = smov 256   ;;  %s1306_s16 = smov 16  }
  0x10   :  { %31 = dma.hbm_to_vmem [thread:$0]  %s1530_s3, 4096, %s26_s28, [#allocation5], %s1305_s15, %s1305_s15, %s1306_s16  }
  0x11   :  { %1302 = dma.done.wait [#allocation5], 4096  }
  0x12   :  { %1303 = vsyncadd [#allocation5], 4294963200  ;;  %v1307_v0 = vmov 0   ;;  %v1178_v1 = vld [vmem:[%s1529_s2 + $0x4] ss:$16 sps:$4 sm:$0xff]   ;;  %v56_v11 = vlaneseq  ;;  %vm132_vm0 = vcmask 261120  }
  0x13   :  { %168 = vmatprep.mubr.bf16.mxu1 %v1307_v0  ;;  %469 = vmatprep.mubr.bf16.mxu0 %v1307_v0  ;;  %v1180_v2 = vld [vmem:[%s1529_s2] ss:$16 sps:$4 sm:$0xff]   ;;  %v1181_v3 = vld [vmem:[%s1529_s2 + $0x24] ss:$16 sps:$4 sm:$0xff]   ;;  %v1186_v5 = vld [vmem:[%s1529_s2 + $0xc] ss:$16 sps:$4 sm:$0xff]  }
  0x14   :  { %136 = vmatprep.subr.bf16.mxu1 %v1178_v1  ;;  %v1183_v4 = vld [vmem:[%s1529_s2 + $0x20] ss:$16 sps:$4 sm:$0xff]   ;;  %v1388_v7 = vld [vmem:[#allocation4 + $0x4] ss:$16 sps:$4 sm:$0xff]   ;;  %v1390_v8 = vld [vmem:[#allocation4] ss:$16 sps:$4 sm:$0xff]  }
  0x15   :  { %137 = vmatpush1.bf16.msra.mxu1 %v1180_v2  ;;  %v44_v6 = vld [vmem:[%s1528_s1] sm:$0x3]  ;;  %v1308_v9 = vmov 1983009808   ;;  %437 = vmatprep.subr.bf16.mxu0 %v1388_v7  ;;  %v1393_v12 = vld [vmem:[#allocation4 + $0x24] ss:$16 sps:$4 sm:$0xff]  }
  0x16   :  { %138 = vmatprep.subr.bf16.mxu1 %v1181_v3  ;;  %1246 = vrcp.f32 %v44_v6  ;;  %v54_v10 = vunpack.c.l.s4 %v1308_v9  ;;  %438 = vmatpush1.bf16.msra.mxu0 %v1390_v8  ;;  %v1396_v13 = vld [vmem:[#allocation4 + $0x20] ss:$16 sps:$4 sm:$0xff]   ;;  %v46_v14 = vld [vmem:[%s1527_s0] sm:$0x3]  ;;  %v1402_v16 = vshrl.u32 %v56_v11, 7  ;;  %vm1310_vm1 = vmmov 0  }
  0x17   :  { %439 = vmatprep.subr.bf16.mxu0 %v1393_v12  ;;  %v1404_v17 = vld [vmem:[#allocation4 + $0x44] ss:$16 sps:$4 sm:$0xff]   ;;  %v47_v18 = vld [vmem:[%s1527_s0 + $0x2] sm:$0x3]  ;;  %v1410_v19 = vld [vmem:[#allocation4 + $0x40] ss:$16 sps:$4 sm:$0xff]  }
  0x18   :  { %v55_v15 = vunpack.c.0.s8 %v54_v10  ;;  %v1413_v21 = vld [vmem:[#allocation4 + $0x64] ss:$16 sps:$4 sm:$0xff]   ;;  %v1419_v26 = vld [vmem:[#allocation4 + $0x60] ss:$16 sps:$4 sm:$0xff]   ;;  %v1189_v30 = vld [vmem:[%s1529_s2 + $0x2c] ss:$16 sps:$4 sm:$0xff]  }
  0x19   :  { %139 = vmatpush1.bf16.msra.mxu1 %v1183_v4  ;;  %v1422_v27 = vld [vmem:[#allocation4 + $0x84] ss:$16 sps:$4 sm:$0xff]   ;;  %v1432_v32 = vld [vmem:[#allocation4 + $0x80] ss:$16 sps:$4 sm:$0xff]   ;;  %v1195_v35 = vld [vmem:[#allocation4 + $0xc] ss:$16 sps:$4 sm:$0xff]  }
  0x1a   :  { %177 = vmatprep.subr.bf16.mxu1 %v1186_v5  ;;  %440 = vmatpush1.bf16.msra.mxu0 %v1396_v13  ;;  %v1416_v24 = vsub.s32 %v55_v15, %v1402_v16  ;;  %v1184_v28 = vld [vmem:[%s1529_s2 + $0x8] ss:$16 sps:$4 sm:$0xff]   ;;  %v1222_v36 = vld [vmem:[#allocation4 + $0xa0] ss:$16 sps:$4 sm:$0xff]   ;;  %v1193_v37 = vld [vmem:[#allocation4 + $0x8] ss:$16 sps:$4 sm:$0xff]  }
  0x1b   :  { %441 = vmatprep.subr.bf16.mxu0 %v1404_v17  ;;  %v1435_v33 = vld [vmem:[#allocation4 + $0xa4] ss:$16 sps:$4 sm:$0xff]   ;;  %v1201_v39 = vld [vmem:[#allocation4 + $0x2c] ss:$16 sps:$4 sm:$0xff]   ;;  %v1228_v40 = vld [vmem:[#allocation4 + $0xc0] ss:$16 sps:$4 sm:$0xff]  }
  0x1c   :  { %v1187_v34 = vld [vmem:[%s1529_s2 + $0x28] ss:$16 sps:$4 sm:$0xff]   ;;  %v1199_v42 = vld [vmem:[#allocation4 + $0x28] ss:$16 sps:$4 sm:$0xff]   ;;  %v1207_v43 = vld [vmem:[#allocation4 + $0x4c] ss:$16 sps:$4 sm:$0xff]  }
  0x1d   :  { %v1226_v38 = vld [vmem:[#allocation4 + $0xc4] ss:$16 sps:$4 sm:$0xff]   ;;  %v1234_v44 = vld [vmem:[#allocation4 + $0xe0] ss:$16 sps:$4 sm:$0xff]   ;;  %v1205_v45 = vld [vmem:[#allocation4 + $0x48] ss:$16 sps:$4 sm:$0xff]  }
  0x1e   :  { %442 = vmatpush1.bf16.msra.mxu0 %v1410_v19  ;;  %v1232_v41 = vld [vmem:[#allocation4 + $0xe4] ss:$16 sps:$4 sm:$0xff]   ;;  %v1213_v46 = vld [vmem:[#allocation4 + $0x6c] ss:$16 sps:$4 sm:$0xff]   ;;  %v1211_v47 = vld [vmem:[#allocation4 + $0x68] ss:$16 sps:$4 sm:$0xff]  }
  0x1f   :  { %443 = vmatprep.subr.bf16.mxu0 %v1413_v21  ;;  %v1219_v48 = vld [vmem:[#allocation4 + $0x8c] ss:$16 sps:$4 sm:$0xff]   ;;  %v1217_v49 = vld [vmem:[#allocation4 + $0x88] ss:$16 sps:$4 sm:$0xff]   ;;  %v74_v56 = vsub.s32 0, %v1402_v16  ;;  %v78_v58 = vsub.s32 1, %v1402_v16 }
  0x20   :  { %v1247_v20 = vpop.eup %1246  ;;  %v1225_v50 = vld [vmem:[#allocation4 + $0xac] ss:$16 sps:$4 sm:$0xff]   ;;  %v1223_v51 = vld [vmem:[#allocation4 + $0xa8] ss:$16 sps:$4 sm:$0xff]   ;;  %v86_v3 = vsub.s32 3, %v1402_v16 }
  0x21   :  { %v48_v22 = vmul.f32 %v1247_v20, %v46_v14  ;;  %v49_v23 = vmul.f32 %v1247_v20, %v47_v18  ;;  %v1231_v52 = vld [vmem:[#allocation4 + $0xcc] ss:$16 sps:$4 sm:$0xff]   ;;  %v1229_v53 = vld [vmem:[#allocation4 + $0xc8] ss:$16 sps:$4 sm:$0xff]  }
  0x22   :  { %444 = vmatpush1.bf16.msra.mxu0 %v1419_v26  ;;  %v1237_v54 = vld [vmem:[#allocation4 + $0xec] ss:$16 sps:$4 sm:$0xff]   ;;  %v1235_v55 = vld [vmem:[#allocation4 + $0xe8] ss:$16 sps:$4 sm:$0xff]  }
  0x23   :  { %v52_v25 = vcombine.low %v48_v22, %v49_v23  ;;  %445 = vmatprep.subr.bf16.mxu0 %v1422_v27  ;;  %v70_v57 = vld [vmem:[%s1531_s4] sm:$0xf] }
  0x24   :  { %v75_v59 = vrot.slane %v70_v57, %v74_v56  ;;  %v79_v60 = vrot.slane %v70_v57, %v78_v58  ;;  %v1238_v56 = vld [vmem:[%s1532_s5] sm:$0xff]   ;;  %v1239_v58 = vld [vmem:[%s1532_s5 + $0x8] sm:$0xff]  }
  0x25   :  { %v59_v29 = vrot.slane %v52_v25, %v1416_v24 }
  0x26   :  { %446 = vmatpush1.bf16.msra.mxu0 %v1432_v32 }
  0x27   :  { %v61_v31 = vpack.c.bf16 %v59_v29, %v59_v29  ;;  %447 = vmatprep.subr.bf16.mxu0 %v1435_v33 }
  0x29   :  { %1061 = vmatmul.mubr.msk.bf16.vlgmr.msra.gmra.mrb[0].mxu1 %vm132_vm0, %v61_v31 }
  0x2a   :  { %178 = vmatpush1.bf16.msra.mxu1 %v1184_v28  ;;  %209 = vmatprep.mubr.bf16.mxu1 %v1307_v0 }
  0x2b   :  { %179 = vmatprep.subr.bf16.mxu1 %v1189_v30  ;;  %448 = vmatpush1.bf16.msra.mxu0 %v1222_v36 }
  0x2c   :  { %449 = vmatprep.subr.bf16.mxu0 %v1226_v38 }
  0x2e   :  { %180 = vmatpush1.bf16.msra.mxu1 %v1187_v34 }
  0x2f   :  { %478 = vmatprep.subr.bf16.mxu1 %v1195_v35  ;;  %450 = vmatpush1.bf16.msra.mxu0 %v1228_v40 }
  0x30   :  { %451 = vmatprep.subr.bf16.mxu0 %v1232_v41 }
  0x31   :  { %1062 = vmatmul.mubr.msk.bf16.vlgmr.msra.gmra.mrb[4].mxu1 %vm132_vm0, %v61_v31 }
  0x32   :  { %479 = vmatpush1.bf16.msra.mxu1 %v1193_v37  ;;  %510 = vmatprep.mubr.bf16.mxu1 %v1307_v0 }
  0x33   :  { %480 = vmatprep.subr.bf16.mxu1 %v1201_v39  ;;  %452 = vmatpush1.bf16.msra.mxu0 %v1234_v44 }
  0x34   :  { %769 = vmatprep.subr.bf16.mxu0 %v1388_v7  ;;  %v87_v7 = vrot.slane %v70_v57, %v86_v3 }
  0x36   :  { %481 = vmatpush1.bf16.msra.mxu1 %v1199_v42  ;;  %470 = vmatmul.mubr.bf16.vlgmr.msra.gmra.mrb[0].mxu0 %v1307_v0 }
  0x37   :  { %482 = vmatprep.subr.bf16.mxu1 %v1207_v43  ;;  %770 = vmatpush1.bf16.msra.mxu0 %v1390_v8 }
  0x38   :  { %771 = vmatprep.subr.bf16.mxu0 %v1393_v12  ;;  %801 = vmatprep.mubr.bf16.mxu0 %v1307_v0 }
  0x3a   :  { %483 = vmatpush1.bf16.msra.mxu1 %v1205_v45 }
  0x3b   :  { %484 = vmatprep.subr.bf16.mxu1 %v1213_v46  ;;  %772 = vmatpush1.bf16.msra.mxu0 %v1396_v13 }
  0x3c   :  { %773 = vmatprep.subr.bf16.mxu0 %v1404_v17 }
  0x3e   :  { %485 = vmatpush1.bf16.msra.mxu1 %v1211_v47 }
  0x3f   :  { %486 = vmatprep.subr.bf16.mxu1 %v1219_v48  ;;  %774 = vmatpush1.bf16.msra.mxu0 %v1410_v19 }
  0x40   :  { %775 = vmatprep.subr.bf16.mxu0 %v1413_v21 }
  0x42   :  { %487 = vmatpush1.bf16.msra.mxu1 %v1217_v49 }
  0x43   :  { %488 = vmatprep.subr.bf16.mxu1 %v1225_v50  ;;  %776 = vmatpush1.bf16.msra.mxu0 %v1419_v26 }
  0x44   :  { %777 = vmatprep.subr.bf16.mxu0 %v1422_v27 }
  0x46   :  { %489 = vmatpush1.bf16.msra.mxu1 %v1223_v51 }
  0x47   :  { %490 = vmatprep.subr.bf16.mxu1 %v1231_v52  ;;  %778 = vmatpush1.bf16.msra.mxu0 %v1432_v32 }
  0x48   :  { %779 = vmatprep.subr.bf16.mxu0 %v1435_v33 }
  0x4a   :  { %491 = vmatpush1.bf16.msra.mxu1 %v1229_v53 }
  0x4b   :  { %492 = vmatprep.subr.bf16.mxu1 %v1237_v54  ;;  %780 = vmatpush1.bf16.msra.mxu0 %v1222_v36 }
  0x4c   :  { %781 = vmatprep.subr.bf16.mxu0 %v1226_v38 }
  0x4e   :  { %493 = vmatpush1.bf16.msra.mxu1 %v1235_v55 }
  0x4f   :  { %810 = vmatprep.subr.bf16.mxu1 %v1195_v35  ;;  %782 = vmatpush1.bf16.msra.mxu0 %v1228_v40 }
  0x50   :  { %783 = vmatprep.subr.bf16.mxu0 %v1232_v41 }
  0x51   :  { %511 = vmatmul.mubr.bf16.vlgmr.msra.gmra.mrb[8].mxu1 %v1307_v0 }
  0x52   :  { %811 = vmatpush1.bf16.msra.mxu1 %v1193_v37  ;;  %842 = vmatprep.mubr.bf16.mxu1 %v1307_v0  ;;  %v82_v0 = vsub.s32 2, %v1402_v16 }
  0x53   :  { %812 = vmatprep.subr.bf16.mxu1 %v1201_v39  ;;  %784 = vmatpush1.bf16.msra.mxu0 %v1234_v44 }
  0x54   :  { %v83_v6 = vrot.slane %v70_v57, %v82_v0  ;;  %v1309_v57 = vmov 0.0   ;;  %v1245_v0 = vld [vmem:[%s1532_s5 + $0x38] sm:$0xff]  }
  0x55   :  { %1151 = vmatprep.subr.bf16.mxu0 %v1309_v57 }
  0x56   :  { %813 = vmatpush1.bf16.msra.mxu1 %v1199_v42 }
  0x57   :  { %814 = vmatprep.subr.bf16.mxu1 %v1207_v43 }
  0x5a   :  { %815 = vmatpush1.bf16.msra.mxu1 %v1205_v45 }
  0x5b   :  { %816 = vmatprep.subr.bf16.mxu1 %v1213_v46 }
  0x5e   :  { %817 = vmatpush1.bf16.msra.mxu1 %v1211_v47 }
  0x5f   :  { %818 = vmatprep.subr.bf16.mxu1 %v1219_v48 }
  0x62   :  { %819 = vmatpush1.bf16.msra.mxu1 %v1217_v49 }
  0x63   :  { %820 = vmatprep.subr.bf16.mxu1 %v1225_v50 }
  0x66   :  { %821 = vmatpush1.bf16.msra.mxu1 %v1223_v51 }
  0x67   :  { %822 = vmatprep.subr.bf16.mxu1 %v1231_v52 }
  0x6a   :  { %823 = vmatpush1.bf16.msra.mxu1 %v1229_v53 }
  0x6b   :  { %824 = vmatprep.subr.bf16.mxu1 %v1237_v54 }
  0x6e   :  { %825 = vmatpush1.bf16.msra.mxu1 %v1235_v55 }
  0xfc   :  { %v170_v61 = vpop.f32.mrb[0].mxu1 }
  0xfd   :  { %v171_v62 = vadd.f32 %v170_v61, %v75_v59  ;;  %v172_v63 = vpop.f32.mrb[1].mxu1  ;;  %v1240_v59 = vld [vmem:[%s1532_s5 + $0x10] sm:$0xff]   ;;  %v1242_v61 = vld [vmem:[%s1532_s5 + $0x20] sm:$0xff]  }
  0xfe   :  { %v173_v1 = vadd.f32 %v172_v63, %v79_v60  ;;  %v174_v2 = vpop.f32.mrb[2].mxu1  ;;  %v1241_v60 = vld [vmem:[%s1532_s5 + $0x18] sm:$0xff]   ;;  %v1244_v63 = vld [vmem:[%s1532_s5 + $0x30] sm:$0xff]  }
  0xff   :  { %v175_v4 = vpop.f32.mrb[3].mxu1 }
 0x100   :  { %v222_v5 = vcombine.low %v171_v62, %v173_v1  ;;  %v1243_v62 = vld [vmem:[%s1532_s5 + $0x28] sm:$0xff]  }
 0x102   :  { %v1469_v15 = vrot.slane %v222_v5, %v1416_v24 }
 0x104   :  { %v211_v8 = vpop.f32.mrb[4].mxu1 }
 0x105   :  { %v212_v9 = vadd.f32 %v211_v8, %v83_v6  ;;  %v213_v10 = vpop.f32.mrb[5].mxu1 }
 0x106   :  { %v214_v11 = vadd.f32 %v213_v10, %v87_v7  ;;  %v215_v12 = vpop.f32.mrb[6].mxu1 }
 0x107   :  { %v216_v13 = vpop.f32.mrb[7].mxu1 }
 0x108   :  { %v223_v14 = vcombine.low %v212_v9, %v214_v11 }
 0x109   :  { %v471_v19 = vpop.f32.mrb[0].mxu0 }
 0x10a   :  { %v1472_v17 = vrot.slane %v223_v14, %v1416_v24  ;;  %v473_v20 = vpop.f32.mrb[1].mxu0 }
 0x10b   :  { %v523_v21 = vcombine.low %v471_v19, %v473_v20  ;;  %v475_v22 = vpop.f32.mrb[2].mxu0 }
 0x10c   :  { %v238_v16 = vcombine.low %v1469_v15, %v1472_v17  ;;  %v239_v18 = vcombine.high %v1469_v15, %v1472_v17  ;;  %v476_v23 = vpop.f32.mrb[3].mxu0 }
 0x10d   :  { %v531_v27 = vrot.slane %v523_v21, %v1416_v24 }
 0x124   :  { %v512_v25 = vpop.f32.mrb[8].mxu1 }
 0x125   :  { %v514_v26 = vpop.f32.mrb[9].mxu1 }
 0x126   :  { %v524_v28 = vcombine.low %v512_v25, %v514_v26  ;;  %v516_v29 = vpop.f32.mrb[10].mxu1 }
 0x127   :  { %v517_v30 = vpop.f32.mrb[11].mxu1 }
 0x128   :  { %v538_v31 = vrot.slane %v524_v28, %v1416_v24 }
 0x12a   :  { %v539_v32 = vcombine.low %v531_v27, %v538_v31 }
 0x12c   :  { %v541_v33 = vadd.f32 %v539_v32, %v238_v16 }
 0x12e   :  { %v1095_v34 = vmul.f32 -1.442695, %v541_v33  ;;  %v549_v35 = vrot.slane %v541_v33, 2  ;;  %v560_v37 = vrot.slane %v541_v33, 6  ;;  %v557_v40 = vrot.slane %v541_v33, 4 }
 0x130   :  { %1248 = vpow2.f32 %v1095_v34  ;;  %v1096_v36 = vmul.f32 -1.442695, %v549_v35  ;;  %v1097_v38 = vmul.f32 -1.442695, %v560_v37 }
 0x132   :  { %1250 = vpow2.f32 %v1096_v36 }
 0x133   :  { %1252 = vpow2.f32 %v1097_v38 }
 0x13a   :  { %v1249_v39 = vpop.eup %1248 }
 0x13b   :  { %v545_v41 = vadd.f32 1.0, %v1249_v39 }
 0x13c   :  { %v1251_v42 = vpop.eup %1250 }
 0x13d   :  { %1254 = vrcp.f32 %v545_v41  ;;  %v554_v43 = vadd.f32 1.0, %v1251_v42  ;;  %v1253_v44 = vpop.eup %1252  ;;  %v1133_v42 = vld [vmem:[%s1533_s6] ss:$0 sm:$0xff] }
 0x13e   :  { %1256 = vtanh.f32 %v557_v40  ;;  %v565_v48 = vadd.f32 1.0, %v1253_v44 }
 0x13f   :  { %1258 = vrcp.f32 %v554_v43 }
 0x140   :  { %1260 = vrcp.f32 %v565_v48 }
 0x147   :  { %v1255_v45 = vpop.eup %1254 }
 0x148   :  { %v1257_v46 = vpop.eup %1256 }
 0x149   :  { %v1259_v47 = vpop.eup %1258  ;;  %v569_v50 = vmul.f32 %v1257_v46, %v1255_v45  ;;  %v1043_v46 = vld [vmem:[%s1534_s7] sm:$0x3] }
 0x14a   :  { %v568_v49 = vmul.f32 0.0, %v1259_v47  ;;  %v1261_v52 = vpop.eup %1260 }
 0x14c   :  { %v1480_v51 = vadd.f32 %v569_v50, %v568_v49 }
 0x14e   :  { %1262 = vtanh.f32 %v1480_v51 }
 0x158   :  { %v1263_v53 = vpop.eup %1262 }
 0x159   :  { %v572_v54 = vmul.f32 %v1263_v53, %v1261_v52 }
 0x15b   :  { %573 = vst [vmem:[#allocation3] sm:$0x3] %v572_v54  ;;  %v576_v55 = vpack.c.bf16 %v572_v54, %v572_v54 }
 0x15d   :  { %802 = vmatmul.mubr.bf16.vlgmr.msra.gmra.mrb[4].mxu0 %v576_v55  ;;  %843 = vmatmul.mubr.bf16.vlgmr.msra.gmra.mrb[12].mxu1 %v576_v55 }
 0x15e   :  { %1152 = vmatpush3.bf16.msra.mxu0 %v1238_v56  ;;  %1167 = vmatprep.mubr.msk.bf16.mxu0 %vm1310_vm1, %v1309_v57 }
 0x15f   :  { %1153 = vmatprep.subr.bf16.mxu0 %v1309_v57 }
 0x162   :  { %1154 = vmatpush3.bf16.msra.mxu0 %v1239_v58  ;;  %v907_v37 = vld [vmem:[#allocation3] sm:$0x3] }
 0x163   :  { %1155 = vmatprep.subr.bf16.mxu0 %v1309_v57 }
 0x166   :  { %1156 = vmatpush3.bf16.msra.mxu0 %v1240_v59 }
 0x167   :  { %1157 = vmatprep.subr.bf16.mxu0 %v1309_v57 }
 0x16a   :  { %1158 = vmatpush3.bf16.msra.mxu0 %v1241_v60 }
 0x16b   :  { %1159 = vmatprep.subr.bf16.mxu0 %v1309_v57 }
 0x16e   :  { %1160 = vmatpush3.bf16.msra.mxu0 %v1242_v61 }
 0x16f   :  { %1161 = vmatprep.subr.bf16.mxu0 %v1309_v57 }
 0x172   :  { %1162 = vmatpush3.bf16.msra.mxu0 %v1243_v62 }
 0x173   :  { %1163 = vmatprep.subr.bf16.mxu0 %v1309_v57 }
 0x176   :  { %1164 = vmatpush3.bf16.msra.mxu0 %v1244_v63 }
 0x177   :  { %1165 = vmatprep.subr.bf16.mxu0 %v1309_v57 }
 0x17a   :  { %1166 = vmatpush3.bf16.msra.mxu0 %v1245_v0 }
 0x230   :  { %v803_v1 = vpop.f32.mrb[4].mxu0  ;;  %v844_v2 = vpop.f32.mrb[12].mxu1 }
 0x231   :  { %v805_v3 = vpop.f32.mrb[5].mxu0  ;;  %v846_v4 = vpop.f32.mrb[13].mxu1 }
 0x232   :  { %v855_v5 = vcombine.low %v803_v1, %v805_v3  ;;  %v856_v6 = vcombine.low %v844_v2, %v846_v4  ;;  %v807_v7 = vpop.f32.mrb[6].mxu0  ;;  %v848_v8 = vpop.f32.mrb[14].mxu1 }
 0x233   :  { %v808_v9 = vpop.f32.mrb[7].mxu0  ;;  %v849_v10 = vpop.f32.mrb[15].mxu1 }
 0x234   :  { %v863_v11 = vrot.slane %v855_v5, %v1416_v24  ;;  %v870_v12 = vrot.slane %v856_v6, %v1416_v24 }
 0x236   :  { %v871_v13 = vcombine.low %v863_v11, %v870_v12 }
 0x238   :  { %v873_v14 = vadd.f32 %v871_v13, %v239_v18 }
 0x23a   :  { %v1130_v16 = vmul.f32 -1.442695, %v873_v14  ;;  %v881_v19 = vrot.slane %v873_v14, 2  ;;  %v892_v21 = vrot.slane %v873_v14, 6  ;;  %v889_v25 = vrot.slane %v873_v14, 4 }
 0x23c   :  { %1264 = vpow2.f32 %v1130_v16  ;;  %v1131_v20 = vmul.f32 -1.442695, %v881_v19  ;;  %v1132_v22 = vmul.f32 -1.442695, %v892_v21 }
 0x23e   :  { %1266 = vpow2.f32 %v1131_v20 }
 0x23f   :  { %1268 = vpow2.f32 %v1132_v22 }
 0x246   :  { %v1265_v23 = vpop.eup %1264 }
 0x247   :  { %v877_v26 = vadd.f32 1.0, %v1265_v23 }
 0x248   :  { %v1267_v27 = vpop.eup %1266 }
 0x249   :  { %1270 = vrcp.f32 %v877_v26  ;;  %v886_v28 = vadd.f32 1.0, %v1267_v27  ;;  %v1269_v29 = vpop.eup %1268 }
 0x24a   :  { %1272 = vtanh.f32 %v889_v25  ;;  %v897_v18 = vadd.f32 1.0, %v1269_v29 }
 0x24b   :  { %1274 = vrcp.f32 %v886_v28 }
 0x24c   :  { %1276 = vrcp.f32 %v897_v18 }
 0x253   :  { %v1271_v30 = vpop.eup %1270 }
 0x254   :  { %v1273_v15 = vpop.eup %1272 }
 0x255   :  { %v1275_v17 = vpop.eup %1274  ;;  %v901_v32 = vmul.f32 %v1273_v15, %v1271_v30 }
 0x256   :  { %v900_v31 = vmul.f32 %v1275_v17, %v1480_v51  ;;  %v1277_v34 = vpop.eup %1276 }
 0x258   :  { %v902_v33 = vadd.f32 %v901_v32, %v900_v31 }
 0x25a   :  { %1278 = vtanh.f32 %v902_v33 }
 0x264   :  { %v1279_v35 = vpop.eup %1278 }
 0x265   :  { %v904_v36 = vmul.f32 %v1279_v35, %v1277_v34 }
 0x267   :  { %906 = vst [vmem:[#allocation3 + $0x2] sm:$0x3] %v904_v36 }
 0x26e   :  { %v908_v38 = vld [vmem:[#allocation3 + $0x2] sm:$0x3] }
 0x26f   :  { %v911_v39 = vcombine.low %v907_v37, %v908_v38 }
 0x271   :  { %v918_v40 = vrot.slane %v911_v39, %v1416_v24 }
 0x273   :  { %v920_v41 = vpack.c.bf16 %v918_v40, %v918_v40 }
 0x275   :  { %1168 = vmatmul.mubr.bf16.vlgmr.msra.gmra.mrb[8].mxu0 %v920_v41 }
 0x348   :  { %v1026_v43 = vpop.f32.mrb[8].mxu0 }
 0x349   :  { %v1027_v44 = vadd.f32 %v1133_v42, %v1026_v43  ;;  %v1169_v45 = vpop.f32.mrb[9].mxu0 }
 0x34a   :  { %v1029_v47 = vpop.f32.mrb[10].mxu0 }
 0x34b   :  { %v1039_v48 = vrot.slane %v1027_v44, %v1416_v24  ;;  %v1170_v49 = vpop.f32.mrb[11].mxu0 }
 0x34d   :  { %v1040_v50 = vcombine.high %v1039_v48, %v1039_v48  ;;  %v1044_v51 = vmul.f32 %v1043_v46, %v1039_v48 }
 0x34f   :  { %v1045_v52 = vmul.f32 %v1043_v46, %v1040_v50  ;;  %1046 = vst [vmem:[%s1535_s8] sm:$0x3] %v1044_v51 }
 0x351   :  { %1047 = vst [vmem:[%s1535_s8 + $0x2] sm:$0x3] %v1045_v52 }
 0x352   :  { %1052 = vsyncpa [#allocation5], 1 }

</bundles_post_ra>
